<compile_context>
chip_gen: v5e
topology: v5e:2x2
jax: 0.10.0
libtpu: 0.0.40
codegen_flags: <defaults>
</compile_context>

<pallas_src>
import jax
import jax.numpy as jnp
from jax.experimental import pallas as pl
from jax.experimental.pallas import tpu as pltpu


def channel_gate_kernel(x_ref, w1_ref, b1_ref, w2_ref, b2_ref, out_ref):
    """Fused ChannelGate for one batch sample.

    x_ref  : (1, C, HW)   activation slab for sample n (HW on the lane axis)
    w1_ref : (Chid, C)    first Linear weight  (PyTorch layout, used as-is)
    b1_ref : (Chid, 1)
    w2_ref : (C, Chid)    second Linear weight (PyTorch layout, used as-is)
    b2_ref : (C, 1)
    out_ref: (1, C, HW)
    """
    x = x_ref[0]                                   # (C, HW), lane-dense
    xf = x.astype(jnp.float32)

    # Global max-pool over the spatial axis: full-lane-width XLU reduction.
    m = jnp.max(xf, axis=-1, keepdims=True)        # (C, 1)

    # MLP in column orientation (y = W @ x + b == (x_row @ W.T + b).T).
    h = jnp.dot(w1_ref[...], m, preferred_element_type=jnp.float32) + b1_ref[...]
    h = jnp.maximum(h, 0.0)                        # ReLU, (Chid, 1)
    o = jnp.dot(w2_ref[...], h, preferred_element_type=jnp.float32) + b2_ref[...]

    # Sigmoid gate, broadcast across the spatial (lane) axis.
    scale = 1.0 / (1.0 + jnp.exp(-o))              # (C, 1)
    out_ref[0] = (xf * scale).astype(out_ref.dtype)


def channel_gate(x_nchw, w1, b1, w2, b2):
    """JAX wrapper reproducing ChannelGate.forward.

    x_nchw : (N, C, H, W)
    w1     : (C//ratio, C)   -- nn.Linear(channel, channel//ratio).weight
    b1     : (C//ratio,)
    w2     : (C, C//ratio)   -- nn.Linear(channel//ratio, channel).weight
    b2     : (C,)
    """
    N, C, H, W = x_nchw.shape
    Chid = w1.shape[0]
    HW = H * W

    # Free reshape: contiguous dim-merge, no data movement.  Spatial axis on lanes.
    x3 = x_nchw.reshape(N, C, HW)

    w1f = w1.astype(jnp.float32)
    w2f = w2.astype(jnp.float32)
    b1c = b1.reshape(Chid, 1).astype(jnp.float32)
    b2c = b2.reshape(C, 1).astype(jnp.float32)

    # VMEM budget: 2x-buffered input block + 2x-buffered output block + weights,
    # with headroom; cap below v7x's 64 MiB physical VMEM.
    block_bytes = C * HW * jnp.dtype(x_nchw.dtype).itemsize
    vmem_limit = int(min(max(5 * block_bytes + (2 << 20), 4 << 20), 60 * 1024 * 1024))

    out3 = pl.pallas_call(
        channel_gate_kernel,
        out_shape=jax.ShapeDtypeStruct((N, C, HW), x_nchw.dtype),
        grid=(N,),
        in_specs=[
            pl.BlockSpec((1, C, HW), lambda n: (n, 0, 0)),
            pl.BlockSpec((Chid, C), lambda n: (0, 0)),
            pl.BlockSpec((Chid, 1), lambda n: (0, 0)),
            pl.BlockSpec((C, Chid), lambda n: (0, 0)),
            pl.BlockSpec((C, 1), lambda n: (0, 0)),
        ],
        out_specs=pl.BlockSpec((1, C, HW), lambda n: (n, 0, 0)),
        compiler_params=pltpu.CompilerParams(
            dimension_semantics=("parallel",),
            vmem_limit_bytes=vmem_limit,
        ),
    )(x3, w1f, b1c, w2f, b2c)

    return out3.reshape(N, C, H, W)


def _reference(x, w1, b1, w2, b2):
    # Pure-JAX reference of ChannelGate.forward (avg_pool branch is unused there).
    m = jnp.max(x.astype(jnp.float32), axis=(2, 3))            # (N, C)
    h = jnp.maximum(m @ w1.T + b1, 0.0)                        # (N, Chid)
    o = h @ w2.T + b2                                          # (N, C)
    scale = jax.nn.sigmoid(o)
    return x * scale[:, :, None, None]


if __name__ == "__main__":
    # ChannelGate(channel=32, ratio=4) on a small activation.
    N, C, H, W = 2, 32, 16, 16
    ratio = 4
    Chid = C // ratio

    key = jax.random.PRNGKey(0)
    kx, kw1, kb1, kw2, kb2 = jax.random.split(key, 5)

    x = jax.random.normal(kx, (N, C, H, W), dtype=jnp.float32)

    # PyTorch nn.Linear default init: U(-1/sqrt(fan_in), 1/sqrt(fan_in)).
    bnd1 = 1.0 / (C ** 0.5)
    w1 = jax.random.uniform(kw1, (Chid, C), jnp.float32, -bnd1, bnd1)
    b1 = jax.random.uniform(kb1, (Chid,), jnp.float32, -bnd1, bnd1)
    bnd2 = 1.0 / (Chid ** 0.5)
    w2 = jax.random.uniform(kw2, (C, Chid), jnp.float32, -bnd2, bnd2)
    b2 = jax.random.uniform(kb2, (C,), jnp.float32, -bnd2, bnd2)

    out = channel_gate(x, w1, b1, w2, b2)
    out = jax.block_until_ready(out)

    ref = _reference(x, w1, b1, w2, b2)
    assert out.shape == (N, C, H, W)
    assert jnp.allclose(out, ref, atol=1e-5, rtol=1e-5), float(jnp.max(jnp.abs(out - ref)))

    print("KERNEL_OK")
</pallas_src>

<mosaic_0001>
module attributes {stable_mosaic.version = 11 : i64} {
  func.func @channel_gate_kernel(%arg0: i32, %arg1: memref<1x32x256xf32, #tpu.memory_space<vmem>>, %arg2: memref<8x32xf32, #tpu.memory_space<vmem>>, %arg3: memref<8x1xf32, #tpu.memory_space<vmem>>, %arg4: memref<32x8xf32, #tpu.memory_space<vmem>>, %arg5: memref<32x1xf32, #tpu.memory_space<vmem>>, %arg6: memref<1x32x256xf32, #tpu.memory_space<vmem>>) attributes {dimension_semantics = [#tpu.dimension_semantics<parallel>], iteration_bounds = array<i64: 2>, scalar_prefetch = 0 : i64, scratch_operands = 0 : i64, tpu.core_type = #tpu.core_type<tc>, window_params = [{transform_indices = @transform_0, window_bounds = array<i64: 1, 32, 256>}, {pipeline_mode = #tpu.pipeline_mode<synchronous>, transform_indices = @transform_1, window_bounds = array<i64: 8, 32>}, {pipeline_mode = #tpu.pipeline_mode<synchronous>, transform_indices = @transform_2, window_bounds = array<i64: 8, 1>}, {pipeline_mode = #tpu.pipeline_mode<synchronous>, transform_indices = @transform_3, window_bounds = array<i64: 32, 8>}, {pipeline_mode = #tpu.pipeline_mode<synchronous>, transform_indices = @transform_4, window_bounds = array<i64: 32, 1>}, {transform_indices = @transform_5, window_bounds = array<i64: 1, 32, 256>}]} {
    %c0 = arith.constant 0 : index
    %c0_0 = arith.constant 0 : index
    %c0_1 = arith.constant 0 : index
    %0 = vector.load %arg1[%c0, %c0_0, %c0_1] : memref<1x32x256xf32, #tpu.memory_space<vmem>>, vector<1x32x256xf32>
    %1 = vector.shape_cast %0 : vector<1x32x256xf32> to vector<32x256xf32>
    %cst = arith.constant dense<0xFF800000> : vector<32xf32>
    %2 = vector.multi_reduction <maximumf>, %1, %cst [1] : vector<32x256xf32> to vector<32xf32>
    %3 = vector.shape_cast %2 : vector<32xf32> to vector<32x1xf32>
    %c0_2 = arith.constant 0 : index
    %c0_3 = arith.constant 0 : index
    %4 = vector.load %arg2[%c0_2, %c0_3] : memref<8x32xf32, #tpu.memory_space<vmem>>, vector<8x32xf32>
    %cst_4 = arith.constant dense<0.000000e+00> : vector<8x1xf32>
    %5 = tpu.matmul %4, %3, %cst_4 {dimension_numbers = #tpu.dot_dimension_numbers<[1], [0], [0], [1], [0, 0, 1, 1], [], []>} : vector<8x32xf32>, vector<32x1xf32>, vector<8x1xf32> -> vector<8x1xf32>
    %c0_5 = arith.constant 0 : index
    %c0_6 = arith.constant 0 : index
    %6 = vector.load %arg3[%c0_5, %c0_6] : memref<8x1xf32, #tpu.memory_space<vmem>>, vector<8x1xf32>
    %7 = arith.addf %5, %6 : vector<8x1xf32>
    %cst_7 = arith.constant 0.000000e+00 : f32
    %8 = vector.broadcast %cst_7 : f32 to vector<8x1xf32>
    %9 = arith.maximumf %7, %8 : vector<8x1xf32>
    %c0_8 = arith.constant 0 : index
    %c0_9 = arith.constant 0 : index
    %10 = vector.load %arg4[%c0_8, %c0_9] : memref<32x8xf32, #tpu.memory_space<vmem>>, vector<32x8xf32>
    %cst_10 = arith.constant dense<0.000000e+00> : vector<32x1xf32>
    %11 = tpu.matmul %10, %9, %cst_10 {dimension_numbers = #tpu.dot_dimension_numbers<[1], [0], [0], [1], [0, 0, 1, 1], [], []>} : vector<32x8xf32>, vector<8x1xf32>, vector<32x1xf32> -> vector<32x1xf32>
    %c0_11 = arith.constant 0 : index
    %c0_12 = arith.constant 0 : index
    %12 = vector.load %arg5[%c0_11, %c0_12] : memref<32x1xf32, #tpu.memory_space<vmem>>, vector<32x1xf32>
    %13 = arith.addf %11, %12 : vector<32x1xf32>
    %cst_13 = arith.constant 0.000000e+00 : f32
    %14 = vector.broadcast %cst_13 : f32 to vector<32x1xf32>
    %15 = arith.subf %14, %13 : vector<32x1xf32>
    %16 = math.exp %15 : vector<32x1xf32>
    %cst_14 = arith.constant 1.000000e+00 : f32
    %17 = vector.broadcast %cst_14 : f32 to vector<32x1xf32>
    %18 = arith.addf %17, %16 : vector<32x1xf32>
    %cst_15 = arith.constant 1.000000e+00 : f32
    %19 = vector.broadcast %cst_15 : f32 to vector<32x1xf32>
    %20 = arith.divf %19, %18 : vector<32x1xf32>
    %21 = vector.broadcast %20 : vector<32x1xf32> to vector<32x256xf32>
    %22 = arith.mulf %1, %21 : vector<32x256xf32>
    %c0_16 = arith.constant 0 : index
    %c0_17 = arith.constant 0 : index
    %c0_18 = arith.constant 0 : index
    %23 = vector.load %arg6[%c0_16, %c0_17, %c0_18] : memref<1x32x256xf32, #tpu.memory_space<vmem>>, vector<1x32x256xf32>
    %24 = vector.shape_cast %23 : vector<1x32x256xf32> to vector<32x256xf32>
    %25 = vector.shape_cast %22 : vector<32x256xf32> to vector<1x32x256xf32>
    tpu.vector_store %arg6[%c0_16, %c0_17, %c0_18], %25 {strides = array<i32>} : memref<1x32x256xf32, #tpu.memory_space<vmem>>, vector<1x32x256xf32>,
    return
  }
  func.func @transform_0(%arg0: i32) -> (i32, i32, i32) {
    %c0_i32 = arith.constant 0 : i32
    %c0_i32_0 = arith.constant 0 : i32
    %c0_i32_1 = arith.constant 0 : i32
    return %arg0, %c0_i32, %c0_i32_0 : i32, i32, i32
  }
  func.func @transform_1(%arg0: i32) -> (i32, i32) {
    %c0_i32 = arith.constant 0 : i32
    %c0_i32_0 = arith.constant 0 : i32
    %c0_i32_1 = arith.constant 0 : i32
    return %c0_i32, %c0_i32_0 : i32, i32
  }
  func.func @transform_2(%arg0: i32) -> (i32, i32) {
    %c0_i32 = arith.constant 0 : i32
    %c0_i32_0 = arith.constant 0 : i32
    %c0_i32_1 = arith.constant 0 : i32
    return %c0_i32, %c0_i32_0 : i32, i32
  }
  func.func @transform_3(%arg0: i32) -> (i32, i32) {
    %c0_i32 = arith.constant 0 : i32
    %c0_i32_0 = arith.constant 0 : i32
    %c0_i32_1 = arith.constant 0 : i32
    return %c0_i32, %c0_i32_0 : i32, i32
  }
  func.func @transform_4(%arg0: i32) -> (i32, i32) {
    %c0_i32 = arith.constant 0 : i32
    %c0_i32_0 = arith.constant 0 : i32
    %c0_i32_1 = arith.constant 0 : i32
    return %c0_i32, %c0_i32_0 : i32, i32
  }
  func.func @transform_5(%arg0: i32) -> (i32, i32, i32) {
    %c0_i32 = arith.constant 0 : i32
    %c0_i32_0 = arith.constant 0 : i32
    %c0_i32_1 = arith.constant 0 : i32
    return %arg0, %c0_i32, %c0_i32_0 : i32, i32, i32
  }
}

</mosaic_0001>

<bundles_post_ra>
// kernel: tpu_custom_call.1
= control target key start
LH: loop header
LB: loop body
LE: loop exit
PB: predicated region body
PF: predicated region fallthrough
CT: control target
= control target key end

     0   :  { %10 = vsyncpa [#allocation3], 0  ;;  %s962_s0 = inlined_call_operand.hbm [shape: f32[2,32,256], index: 0, kind: input, shape index: {}]   ;;  %s963_s1 = inlined_call_operand.vmem [shape: f32[8,32], index: 1, kind: input, shape index: {}]   ;;  %s964_s2 = inlined_call_operand.vmem [shape: f32[8,1], index: 2, kind: input, shape index: {}]   ;;  %s965_s3 = inlined_call_operand.vmem [shape: f32[32,8], index: 3, kind: input, shape index: {}]   ;;  %s966_s4 = inlined_call_operand.vmem [shape: f32[32,1], index: 4, kind: input, shape index: {}]   ;;  %s967_s5 = inlined_call_operand.hbm [shape: f32[2,32,256], index: 5, kind: output, shape index: {}]  }
   0x1   :  { %12 = vsyncpa [#allocation3 + $0x1], 0 }
   0x2   :  { %13 = vsyncpa [#allocation4], 0 }
   0x3   :  { %15 = vsyncpa [#allocation4 + $0x1], 0  ;;  %s769_s18 = smov 0   ;;  %s771_s19 = smov 0  }
   0x4   :  { %s773_s20 = smov 0   ;;  %s775_s21 = smov 0  }
   0x5 LB: > { %s790_s22 = sadd.s32 4294967295, %s732_s21   ;;  %s543_s23 = sadd.s32 4294967294, %s732_s21   ;;  %s732_s21 = sphi %s775_s21, %s977_s21   ;;  %s728_s20 = sphi %s773_s20, %s976_s20   ;;  %s724_s19 = sphi %s771_s19, %s975_s19   ;;  %s720_s18 = sphi %s769_s18, %s974_s18  }
   0x6   : > { %s794_s24 = sadd.s32 1, %s732_s21   ;;  %s28_s25 = sadd.s32 1, %s728_s20 }
   0x7   : > { %s25_s26 = ssub.s32 %s732_s21, %s794_s24  ;;  %p35_p0 = scmp.ne.s32.totalorder %s728_s20, %s724_s19 }
   0x8   : > { %p26_p1 = scmp.eq.s32.totalorder %s25_s26, 0  ;;  %p36_p2 = scmp.eq.s32.totalorder %s732_s21, 0 }
   0x9   : > { %p41_p3 = scmp.ne.s32.totalorder %s724_s19, %s720_s18  ;;  %p42_p4 = scmp.eq.s32.totalorder %s790_s22, 0 }
   0xa   : > { %s806_s27 = scalar_select %p26_p1, %s728_s20, %s28_s25  }
   0xb   : > { %p808_p5 = por %p36_p2, %p35_p0  ;;  %p812_p6 = por %p42_p4, %p41_p3 }
   0xc   : > { %p149_p7 = scmp.eq.s32.totalorder %s790_s22, 1  ;;  %p155_p8 = scmp.eq.s32.totalorder %s543_s23, 1 }
   0xd   : > { %p578_p10 = scmp.lt.s32.totalorder %s732_s21, 2  ;;  %s187_s7 = sand.u32 1, %s728_s20  }
   0xe   : > { %p819_p11 = por %p149_p7, %p35_p0  ;;  %p823_p12 = por %p155_p8, %p41_p3 }
   0xf   : > { %s562_s8 = sshll.u32 %s732_s21, 6  ;;  %s546_s9 = sshll.u32 %s187_s7, 6 }
  0x10   : > { %s196_s12 = scalar_lea.hbm %s962_s0, %s562_s8  ;;  %s191_s14 = scalar_lea.vmem [#allocation2], %s546_s9 }
  0x11   : > { %s197_s13 = sshll.u32 %s196_s12, 4  ;;  %s199_s15 = sshll.u32 %s191_s14, 4  ;;  %s198_s13 = int_to_ptr.hbm [resolvable:$true] %s197_s13  ;;  %s200_s15 = int_to_ptr.vmem [resolvable:$true] %s199_s15 }
  0x12   : > { %p834_p13 = pnand %p578_p10, %p808_p5  ;;  %p549_p0 = scmp.ge.s32.totalorder %s732_s21, 1 }
  0x13   : > { %p207_p1 = scmp.lt.s32.totalorder %s732_s21, 3  ;;  %s188_s17 = scalar_lea.sflag [#allocation3], %s187_s7 }
  0x14   : > { %s636_s23 = sshra.s32 %s198_s13, 4  ;;  %p640_p3 = pneg %p834_p13  ;;  %s637_s23 = int_to_ptr.hbm [resolvable:$true] %s636_s23 }
  0x15   : > { %s638_s25 = scalar_lea.hbm %s637_s23, 64  ;;  %s643_s28 = scalar_lea.hbm %s962_s0, 128 }
  0x16   : > { %p639_p2 = scmp.ne.s32.totalorder %s637_s23, %s638_s25  ;;  %p644_p5 = scmp.lt.s32.totalorder %s637_s23, %s962_s0 }
  0x17   : > { %p645_p8 = scmp.lt.s32.totalorder %s643_s28, %s638_s25 }
  0x18   : > { %p641_p4 = pnand %p640_p3, %p639_p2 }
  0x19   : > { %p646_p10 = por %p645_p8, %p644_p5 }
  0x1a   : > { %p642_p7 = pneg %p641_p4 }
  0x1c   : > { %p647_p9 = pnand %p646_p10, %p642_p7 }
  0x1e   : > { %650 = shalt.err (!%p647_p9)
}
  0x1f   : > { %s734_s7 = smov 256   ;;  %s735_s11 = smov 16  }
  0x20   : > { %573 = dma.hbm_to_vmem [thread:$0]  (!%p834_p13), %s198_s13, 1024, %s200_s15, %s188_s17, %s734_s7, %s734_s7, %s735_s11  }
  0x21   : > { %p208_p2 = pnand %p549_p0, %p207_p1 }
  0x22   : > { %s855_s12 = sand.u32 (!%p208_p2), 1, %s724_s19  }
  0x23   : > { %211 = sbr.rel (%p208_p2) target bundleno = 599 (0x257), region = 40  ;;  %s550_s14 = sshll.u32 (!%p208_p2), %s855_s12, 6 }
  0x24   : > { %s214_s23 = scalar_lea.sflag (!%p208_p2), [#allocation3], %s855_s12  ;;  %s217_s25 = scalar_lea.vmem (!%p208_p2), [#allocation2], %s550_s14 }
  0x28   : > { %711 = dma.done.wait (%p812_p6), %s214_s23, 1024  }
  0x29   : > { %713 = vsyncadd (%p812_p6), %s214_s23, 4294966272  ;;  %v865_v0 = vld [vmem:[%s217_s25 + $0x30] sm:$0xff]  ;;  %v867_v1 = vld [vmem:[%s217_s25 + $0x38] sm:$0xff]  ;;  %vm267_vm0 = vcmask 261120   ;;  %vm300_vm1 = vcmask 64512   ;;  %v736_v27 = vmov 0  }
  0x2a   : > { %v869_v2 = vld [vmem:[%s217_s25 + $0x10] sm:$0xff]  ;;  %v262_v3 = vmax.f32 %v865_v0, %v867_v1  ;;  %v873_v4 = vld [vmem:[%s217_s25 + $0x18] sm:$0xff]  ;;  %v877_v6 = vld [vmem:[%s217_s25 + $0x20] sm:$0xff]  ;;  %617 = vset.pattern.permute.xlu2 %v736_v27  ;;  %619 = vset.pattern.permute.xlu1 %v736_v27  ;;  %s244_s8 = scalar_lea.vmem [#allocation5], %s550_s14  ;;  %s563_s28 = sshll.u32 %s790_s22, 6 }
  0x2b   : > { %v256_v5 = vmax.f32 %v869_v2, %v873_v4  ;;  %v879_v7 = vld [vmem:[%s217_s25 + $0x28] sm:$0xff]  ;;  %v881_v8 = vld [vmem:[%s217_s25] sm:$0xff]  ;;  %v295_v23 = vld [vmem:[%s965_s3 + $0x18] sm:$0xff]  ;;  %618 = vset.pattern.permute.xlu0 %v736_v27  ;;  %s466_s14 = scalar_lea.hbm %s967_s5, %s563_s28  ;;  %s467_s7 = sshll.u32 %s244_s8, 4  ;;  %s468_s7 = int_to_ptr.vmem [resolvable:$true] %s467_s7 }
  0x2c   : > { %263 = vmax.xlane.f32.xlu0 %v262_v3  ;;  %v883_v9 = vld [vmem:[%s217_s25 + $0x8] sm:$0xff]  ;;  %v259_v10 = vmax.f32 %v877_v6, %v879_v7  ;;  %v265_v16 = vld [vmem:[%s963_s1] sm:$0xff]  ;;  %v294_v24 = vld [vmem:[%s965_s3 + $0x10] sm:$0xff]  ;;  %s469_s11 = sshll.u32 %s466_s14, 4  ;;  %s455_s22 = scalar_lea.sflag [#allocation4], %s855_s12  ;;  %s470_s11 = int_to_ptr.hbm [resolvable:$true] %s469_s11 }
  0x2d   : > { %257 = vmax.xlane.f32.xlu1 %v256_v5  ;;  %v253_v11 = vmax.f32 %v881_v8, %v883_v9  ;;  %v266_v17 = vld [vmem:[%s964_s2] sm:$0xff]  ;;  %v293_v22 = vld [vmem:[%s965_s3 + $0x8] sm:$0xff]  ;;  %v299_v32 = vld [vmem:[%s966_s4 + $0x18] sm:$0xff]  ;;  %s680_s23 = sshra.s32 %s470_s11, 4  ;;  %s686_s15 = scalar_lea.hbm %s967_s5, 128  ;;  %s681_s23 = int_to_ptr.hbm [resolvable:$true] %s680_s23 }
  0x2e   : > { %v292_v21 = vld [vmem:[%s965_s3] sm:$0xff]  ;;  %v297_v31 = vld [vmem:[%s966_s4 + $0x8] sm:$0xff]  ;;  %v298_v42 = vld [vmem:[%s966_s4 + $0x10] sm:$0xff]  ;;  %s682_s25 = scalar_lea.hbm %s681_s23, 64  ;;  %p687_p0 = scmp.lt.s32.totalorder %s681_s23, %s967_s5 }
  0x2f   : > { %v296_v25 = vld [vmem:[%s966_s4] sm:$0xff]  ;;  %p683_p6 = scmp.ne.s32.totalorder %s681_s23, %s682_s25  ;;  %p688_p1 = scmp.lt.s32.totalorder %s686_s15, %s682_s25 }
  0x31   : > { %p684_p9 = pnand %p683_p6, %p819_p11  ;;  %p689_p3 = por %p688_p1, %p687_p0 }
  0x33   : > { %p685_p13 = pneg %p684_p9 }
  0x34   : > { %260 = vmax.xlane.f32.xlu0 %v259_v10 }
  0x35   : > { %254 = vmax.xlane.f32.xlu1 %v253_v11  ;;  %p690_p4 = pnand %p689_p3, %p685_p13 }
  0x9f   : > { %v264_v12 = vpop.xlane.xlu0 %263 }
  0xa0   : > { %283 = vmatpush.msra.mxu0 %v264_v12  ;;  %v258_v13 = vpop.xlane.xlu1 %257 }
  0xa7   : > { %v261_v14 = vpop.xlane.xlu0 %260 }
  0xa8   : > { %284 = vmatpush.msra.mxu0 %v261_v14  ;;  %v255_v15 = vpop.xlane.xlu1 %254 }
  0xaa   : > { %285 = vmatpush.msra.mxu0 %v258_v13 }
  0xac   : > { %286 = vmatpush.msra.mxu0 %v255_v15 }
  0xad   : > { %552 = vmatmul.msk.f32.vlgmr.msra.gmra.mxu0 %vm267_vm0, %v265_v16 }
 0x12a   : > { %v288_v18 = vpop.f32.mrf.mxu0 }
 0x12b   : > { %v289_v19 = vadd.f32 %v288_v18, %v266_v17 }
 0x12d   : > { %v291_v20 = vmax.f32 %v289_v19, 0.0 }
 0x12f   : > { %328 = vmatpush.msra.mxu1 %v291_v20  ;;  %564 = vmatpush.msra.mxu2 %v291_v20 }
 0x130   : > { %565 = vmatpush.msra.mxu3 %v291_v20  ;;  %553 = vmatmul.msk.f32.vlgmr.msra.gmra.mxu1 %vm300_vm1, %v292_v21 }
 0x131   : > { %554 = vmatmul.msk.f32.vlgmr.msra.gmra.mxu2 %vm300_vm1, %v293_v22  ;;  %556 = vmatmul.msk.f32.vlgmr.msra.gmra.mxu3 %vm300_vm1, %v295_v23 }
 0x139   : > { %555 = vmatmul.msk.f32.gmra.mxu2 %vm300_vm1, %v294_v24 }
 0x1ad   : > { %v330_v26 = vpop.f32.mrf.mxu1 }
 0x1ae   : > { %v331_v28 = vadd.f32 %v330_v26, %v296_v25 }
 0x1b0   : > { %v342_v29 = vsub.f32 0.0, %v331_v28 }
 0x1b2   : > { %v346_v30 = vmul.f32 1.442695, %v342_v29 }
 0x1b4   : > { %620 = vpow2.f32 %v346_v30  ;;  %v333_v33 = vpop.f32.mrf.mxu2  ;;  %v339_v34 = vpop.f32.mrf.mxu3 }
 0x1b5   : > { %v334_v35 = vadd.f32 %v333_v33, %v297_v31  ;;  %v340_v36 = vadd.f32 %v339_v34, %v299_v32 }
 0x1b7   : > { %v343_v37 = vsub.f32 0.0, %v334_v35  ;;  %v345_v38 = vsub.f32 0.0, %v340_v36 }
 0x1b9   : > { %v348_v39 = vmul.f32 1.442695, %v343_v37  ;;  %v352_v40 = vmul.f32 1.442695, %v345_v38 }
 0x1ba   : > { %v621_v41 = vpop.eup %620 }
 0x1bb   : > { %v354_v43 = vadd.f32 1.0, %v621_v41  ;;  %622 = vpow2.f32 %v348_v39 }
 0x1bc   : > { %624 = vpow2.f32 %v352_v40  ;;  %v336_v44 = vpop.f32.mrf.mxu2 }
 0x1bd   : > { %626 = vrcp.f32 %v354_v43  ;;  %v337_v45 = vadd.f32 %v336_v44, %v298_v42  ;;  %v369_v54 = vand.u32 2147483648, %v354_v43  ;;  %vm363_vm2 = vweird.f32 %v354_v43 }
 0x1be   : > { %v367_v56 = vand.u32 2147483647, %v354_v43 }
 0x1bf   : > { %v344_v46 = vsub.f32 0.0, %v337_v45  ;;  %v370_v59 = vor.u32 1.1754944e-38, %v369_v54 }
 0x1c0   : > { %vm368_vm5 = vcmp.eq.f32.partialorder %v367_v56, 8.507059e+37 }
 0x1c1   : > { %v623_v47 = vpop.eup %622  ;;  %v350_v48 = vmul.f32 1.442695, %v344_v46 }
 0x1c2   : > { %v625_v49 = vpop.eup %624  ;;  %v355_v50 = vadd.f32 1.0, %v623_v47 }
 0x1c3   : > { %v627_v51 = vpop.eup %626  ;;  %v357_v52 = vadd.f32 1.0, %v625_v49  ;;  %628 = vpow2.f32 %v350_v48 }
 0x1c4   : > { %630 = vrcp.f32 %v355_v50  ;;  %v359_v53 = vmul.f32 %v627_v51, %v354_v43  ;;  %vm364_vm3 = vweird.f32 %v627_v51  ;;  %v384_v16 = vand.u32 2147483648, %v355_v50 }
 0x1c5   : > { %632 = vrcp.f32 %v357_v52  ;;  %vm365_vm4 = vmor %vm363_vm2, %vm364_vm3  ;;  %vm408_vm6 = vweird.f32 %v357_v52  ;;  %v414_v14 = vand.u32 2147483648, %v357_v52  ;;  %v412_v18 = vand.u32 2147483647, %v357_v52 }
 0x1c6   : > { %v360_v55 = vsub.f32 1.0, %v359_v53  ;;  %v382_v19 = vand.u32 2147483647, %v355_v50  ;;  %vm378_vm9 = vweird.f32 %v355_v50  ;;  %v385_v25 = vor.u32 1.1754944e-38, %v384_v16 }
 0x1c7   : > { %v415_v23 = vor.u32 1.1754944e-38, %v414_v14  ;;  %vm413_vm12 = vcmp.eq.f32.partialorder %v412_v18, 8.507059e+37 }
 0x1c8   : > { %v361_v57 = vmul.f32 %v627_v51, %v360_v55  ;;  %vm383_vm13 = vcmp.eq.f32.partialorder %v382_v19, 8.507059e+37 }
 0x1c9   : > { %v629_v58 = vpop.eup %628 }
 0x1ca   : > { %v631_v60 = vpop.eup %630  ;;  %v356_v61 = vadd.f32 1.0, %v629_v58  ;;  %v362_v62 = vadd.f32 %v627_v51, %v361_v57 }
 0x1cb   : > { %v633_v63 = vpop.eup %632  ;;  %v374_v3 = vmul.f32 %v631_v60, %v355_v50  ;;  %vm379_vm7 = vweird.f32 %v631_v60 }
 0x1cc   : > { %634 = vrcp.f32 %v356_v61  ;;  %v366_v5 = vsel %vm365_vm4, %v627_v51, %v362_v62  ;;  %v404_v10 = vmul.f32 %v633_v63, %v357_v52  ;;  %vm409_vm8 = vweird.f32 %v633_v63  ;;  %vm380_vm10 = vmor %vm378_vm9, %vm379_vm7 }
 0x1cd   : > { %v371_v11 = vsel %vm368_vm5, %v370_v59, %v366_v5  ;;  %v375_v12 = vsub.f32 1.0, %v374_v3  ;;  %vm410_vm11 = vmor %vm408_vm6, %vm409_vm8  ;;  %v399_v31 = vand.u32 2147483648, %v356_v61  ;;  %v397_v33 = vand.u32 2147483647, %v356_v61 }
 0x1ce   : > { %420 = vperm.xlu2 %617, %v371_v11   ;;  %v405_v13 = vsub.f32 1.0, %v404_v10  ;;  %vm393_vm15 = vweird.f32 %v356_v61 }
 0x1cf   : > { %v376_v15 = vmul.f32 %v631_v60, %v375_v12  ;;  %v400_v35 = vor.u32 1.1754944e-38, %v399_v31  ;;  %vm398_vm1 = vcmp.eq.f32.partialorder %v397_v33, 8.507059e+37 }
 0x1d0   : > { %v406_v17 = vmul.f32 %v633_v63, %v405_v13 }
 0x1d1   : > { %v377_v20 = vadd.f32 %v631_v60, %v376_v15 }
 0x1d2   : > { %v635_v21 = vpop.eup %634  ;;  %v407_v22 = vadd.f32 %v633_v63, %v406_v17 }
 0x1d3   : > { %v381_v24 = vsel %vm380_vm10, %v631_v60, %v377_v20  ;;  %v389_v26 = vmul.f32 %v635_v21, %v356_v61  ;;  %vm394_vm14 = vweird.f32 %v635_v21 }
 0x1d4   : > { %v411_v27 = vsel %vm410_vm11, %v633_v63, %v407_v22  ;;  %v386_v29 = vsel %vm383_vm13, %v385_v25, %v381_v24  ;;  %vm395_vm0 = vmor %vm393_vm15, %vm394_vm14 }
 0x1d5   : > { %v416_v28 = vsel %vm413_vm12, %v415_v23, %v411_v27  ;;  %v390_v30 = vsub.f32 1.0, %v389_v26 }
 0x1d6   : > { %435 = vperm.xlu1 %619, %v416_v28   ;;  %425 = vperm.xlu2 %617, %v386_v29  }
 0x1d7   : > { %v391_v32 = vmul.f32 %v635_v21, %v390_v30 }
 0x1d9   : > { %v392_v34 = vadd.f32 %v635_v21, %v391_v32 }
 0x1db   : > { %v396_v36 = vsel %vm395_vm0, %v635_v21, %v392_v34 }
 0x1dc   : > { %v401_v37 = vsel %vm398_vm1, %v400_v35, %v396_v36 }
 0x1dd   : > { %430 = vperm.xlu0 %618, %v401_v37  }
 0x228   : > { %v421_v38 = vpop.permute.xlu2 %420 }
 0x229   : > { %v438_v39 = vmul.f32 %v421_v38, %v881_v8  ;;  %v439_v40 = vmul.f32 %v421_v38, %v883_v9 }
 0x22b   : > { %446 = vst [vmem:[%s244_s8] sm:$0xff] %v438_v39 }
 0x22c   : > { %447 = vst [vmem:[%s244_s8 + $0x8] sm:$0xff] %v439_v40 }
 0x230   : > { %v426_v41 = vpop.permute.xlu2 %425 }
 0x231   : > { %v440_v42 = vmul.f32 %v426_v41, %v869_v2  ;;  %v441_v43 = vmul.f32 %v426_v41, %v873_v4 }
 0x233   : > { %448 = vst [vmem:[%s244_s8 + $0x10] sm:$0xff] %v440_v42 }
 0x234   : > { %449 = vst [vmem:[%s244_s8 + $0x18] sm:$0xff] %v441_v43 }
 0x248   : > { %v436_v44 = vpop.permute.xlu1 %435 }
 0x249   : > { %v444_v45 = vmul.f32 %v436_v44, %v865_v0  ;;  %v445_v8 = vmul.f32 %v436_v44, %v867_v1 }
 0x24b   : > { %452 = vst [vmem:[%s244_s8 + $0x30] sm:$0xff] %v444_v45 }
 0x24c   : > { %453 = vst [vmem:[%s244_s8 + $0x38] sm:$0xff] %v445_v8 }
 0x24f   : > { %v431_v2 = vpop.permute.xlu0 %430 }
 0x250   : > { %v442_v4 = vmul.f32 %v431_v2, %v877_v6  ;;  %v443_v9 = vmul.f32 %v431_v2, %v879_v7 }
 0x252   : > { %450 = vst [vmem:[%s244_s8 + $0x20] sm:$0xff] %v442_v4 }
 0x253   : > { %451 = vst [vmem:[%s244_s8 + $0x28] sm:$0xff] %v443_v9 }
 0x254   : > { %693 = shalt.err (!%p690_p4)
}
 0x255   : > { %s737_s12 = smov 256   ;;  %s738_s26 = smov 16  }
 0x256   : > { %568 = dma.vmem_to_hbm [thread:$0]  (%p819_p11), %s468_s7, 1024, %s470_s11, %s455_s22, %s737_s12, %s737_s12, %s738_s26  }
 0x257 PF: > { %s484_s8 = sand.u32 1, %s720_s18   ;;  %p973_p7 = scmp.ge.s32.totalorder %s732_s21, 2 }
 0x258   : > { %s485_s28 = scalar_lea.sflag [#allocation4], %s484_s8 }
 0x259   : > { %p575_p5 = pnand %p973_p7, %p823_p12 }
 0x25b   : > { %p576_p8 = pneg %p575_p5 }
 0x25d   : > { %715 = dma.done.wait (%p576_p8), %s485_s28, 1024  }
 0x25e   : > { %717 = vsyncadd (%p576_p8), %s485_s28, 4294966272  ;;  %p18_p10 = scmp.ge.s32.totalorder %s794_s24, 4   ;;  %s974_s18 = smov %s724_s19 }
 0x25f   : > { %s975_s19 = smov %s728_s20  ;;  %s976_s20 = smov %s806_s27 }
 0x260   : > { %s977_s21 = smov %s794_s24  ;;  %20 = sbr.rel (!%p18_p10) target bundleno = 5 (0x5), region = 85 }
 0x265   :  { %491 = vsyncpa [#allocation3], 1 }
 0x266   :  { %493 = vsyncpa [#allocation3 + $0x1], 1 }
 0x267   :  { %494 = vsyncpa [#allocation4], 1 }
 0x268   :  { %496 = vsyncpa [#allocation4 + $0x1], 1 }

</bundles_post_ra>
